<compile_context>
chip_gen: v7x
topology: tpu7x:2x2x1
jax: 0.10.0
libtpu: 0.0.40
codegen_flags: <defaults>
</compile_context>

<pallas_src>
import functools

import jax
import jax.numpy as jnp
from jax.experimental import pallas as pl
from jax.experimental.pallas import tpu as pltpu


# ----------------------------------------------------------------------------
# dimensions
# ----------------------------------------------------------------------------
FEAT_DIM = 32
RATING_DIM = 16
REVIEW_DIM = 16
EMB_DIM = RATING_DIM + REVIEW_DIM          # 32
OUT_W = 128                                # lane-dense packed output width
# packed output lane layout: [user 0:32 | item 32:64 | revA 64:80 | revB 80:96 | pad]
_U0 = 0
_I0 = EMB_DIM
_RA0 = 2 * EMB_DIM
_RB0 = 2 * EMB_DIM + REVIEW_DIM


# ----------------------------------------------------------------------------
# Fused Pallas kernel (entire forward pass, domain-agnostic: the wrapper bakes
# the domain into SEL / W1 / HEAD_W, so there is no in-kernel branching)
# ----------------------------------------------------------------------------
def _fused_kernel(a_ref, x_ref, w_ref, att_ref, sel_ref,
                  w1_ref, b1_ref, hw_ref, hb_ref, out_ref):
    f32 = jnp.float32
    b = out_ref.shape[0]

    # (1)+(2): all four GCNs as two block-diagonal matmuls, relu epilogue on VPU.
    xw = jnp.dot(x_ref[...], w_ref[...], preferred_element_type=f32)          # (128, 32)
    emb = jnp.maximum(jnp.dot(a_ref[...], xw, preferred_element_type=f32), 0.0)

    # (3): one selection matmul = row gathers + rating|review concat + attention gather.
    table = jnp.concatenate([emb, att_ref[...]], axis=0)                       # (128+N, 32)
    g = jnp.dot(sel_ref[...], table, preferred_element_type=f32)              # (4B, 32)
    user_p = g[0 * b:1 * b]        # domain's own user embedding
    user_s = g[1 * b:2 * b]        # other domain's user embedding
    item_in = g[2 * b:3 * b]
    w_att = g[3 * b:4 * b]

    # attention blend (elementwise, VPU)
    user_in = user_p * w_att + user_s * (1.0 - w_att)

    # (4): both MLP layer-1s in one block-diagonal matmul.
    h = jnp.concatenate([user_in, item_in], axis=1)                            # (B, 64)
    h = jnp.maximum(jnp.dot(h, w1_ref[...], preferred_element_type=f32)
                    + b1_ref[...], 0.0)

    # (5): fused head = user MLP-2 | item MLP-2 | review_A[u] | review_B[u] placement.
    tail = jnp.concatenate([h, user_p, user_s], axis=1)                        # (B, 128)
    out_ref[...] = jnp.dot(tail, hw_ref[...], preferred_element_type=f32) + hb_ref[...]


# ----------------------------------------------------------------------------
# One-time parameter packing (hoisted out of the per-call path)
# ----------------------------------------------------------------------------
def _set_block(dst, src, r0, c0):
    src = jnp.asarray(src, jnp.float32)
    return dst.at[r0:r0 + src.shape[0], c0:c0 + src.shape[1]].set(src)


def prepare_packed(params):
    """Build all static packed operands once per parameter set."""
    f32 = jnp.float32
    n_a = params["adj_rating_A"].shape[0]
    n_b = params["adj_rating_B"].shape[0]
    n_nodes = 2 * n_a + 2 * n_b
    offs = (0, n_a, 2 * n_a, 2 * n_a + n_b)   # rating_A, review_A, rating_B, review_B rows

    a_bd = jnp.zeros((n_nodes, n_nodes), f32)         # block-diag normalized adjacency
    x_bd = jnp.zeros((n_nodes, 4 * FEAT_DIM), f32)    # block-diag node features
    w_bd = jnp.zeros((4 * FEAT_DIM, EMB_DIM), f32)    # stacked, lane-placed GCN weights
    adjs = (params["adj_rating_A"], params["adj_review_A"],
            params["adj_rating_B"], params["adj_review_B"])
    feats = (params["feat_rating_A"], params["feat_review_A"],
             params["feat_rating_B"], params["feat_review_B"])
    ws = (params["w_gcn_A"], params["w_rgcn_A"], params["w_gcn_B"], params["w_rgcn_B"])
    wcols = (0, RATING_DIM, 0, RATING_DIM)            # rating -> [0,16), review -> [16,32)
    for k in range(4):
        a_bd = _set_block(a_bd, adjs[k], offs[k], offs[k])
        x_bd = _set_block(x_bd, feats[k], offs[k], k * FEAT_DIM)
        w_bd = _set_block(w_bd, ws[k], k * FEAT_DIM, wcols[k])

    eye_r = jnp.eye(REVIEW_DIM, dtype=f32)

    def head(umlp, imlp, rev_p_col, rev_s_col):
        # layer-1: block-diag(uw1, iw1) acting on [user_in | item_in]
        w1 = jnp.zeros((2 * EMB_DIM, 2 * EMB_DIM), f32)
        w1 = _set_block(w1, umlp["w1"], 0, 0)
        w1 = _set_block(w1, imlp["w1"], EMB_DIM, EMB_DIM)
        b1 = jnp.concatenate([jnp.asarray(umlp["b1"], f32),
                              jnp.asarray(imlp["b1"], f32)], axis=1)           # (1, 64)
        # head: rows [0,32)=uw2, [32,64)=iw2, [64,96)=user_p review, [96,128)=user_s review
        hw = jnp.zeros((4 * EMB_DIM, OUT_W), f32)
        hw = _set_block(hw, umlp["w2"], 0, _U0)
        hw = _set_block(hw, imlp["w2"], EMB_DIM, _I0)
        hw = _set_block(hw, eye_r, 2 * EMB_DIM + RATING_DIM, rev_p_col)
        hw = _set_block(hw, eye_r, 3 * EMB_DIM + RATING_DIM, rev_s_col)
        hb = jnp.zeros((1, OUT_W), f32)
        hb = _set_block(hb, umlp["b2"], 0, _U0)
        hb = _set_block(hb, imlp["b2"], 0, _I0)
        return w1, b1, hw, hb

    # domain A: user_p = user_A (review_A -> lanes [64,80)), user_s = user_B
    w1_a, b1_a, hw_a, hb_a = head(params["umlp_A"], params["imlp_A"], _RA0, _RB0)
    # domain B: user_p = user_B (review_B -> lanes [80,96)), user_s = user_A
    w1_b, b1_b, hw_b, hb_b = head(params["umlp_B"], params["imlp_B"], _RB0, _RA0)

    return dict(
        A_bd=a_bd, X_bd=x_bd, W_bd=w_bd,
        att_A=jnp.asarray(params["user_W_Attention_A_A"], f32),
        att_B=jnp.asarray(params["user_W_Attention_B_B"], f32),
        W1_A=w1_a, B1_A=b1_a, HW_A=hw_a, HB_A=hb_a,
        W1_B=w1_b, B1_B=b1_b, HW_B=hw_b, HB_B=hb_b,
    )


# ----------------------------------------------------------------------------
# Per-call selection matrix ("two-hot" gather + concat-sum rows, built outside
# the kernel as a lane-dense f32 operand; no int indices enter the kernel)
# ----------------------------------------------------------------------------
def _build_sel(u, i, domain, n_a, n_b):
    batch = u.shape[0]
    off_ra, off_va, off_rb, off_vb = 0, n_a, 2 * n_a, 2 * n_a + n_b
    off_att = 2 * n_a + 2 * n_b
    width = off_att + (n_a if domain == "A" else n_b)
    cols = jax.lax.broadcasted_iota(jnp.int32, (batch, width), 1)
    u_ = u.astype(jnp.int32)[:, None]
    i_ = i.astype(jnp.int32)[:, None]

    def twohot(idx, o1, o2):
        return ((cols == idx + o1) | (cols == idx + o2)).astype(jnp.float32)

    user_a = twohot(u_, off_ra, off_va)     # gathers rating_A[u] + review_A[u] == concat
    user_b = twohot(u_, off_rb, off_vb)
    if domain == "A":
        user_p, user_s = user_a, user_b
        item_rows = twohot(i_, off_ra, off_va)
    else:
        user_p, user_s = user_b, user_a
        item_rows = twohot(i_, off_rb, off_vb)
    att_rows = (cols == u_ + off_att).astype(jnp.float32)
    return jnp.concatenate([user_p, user_s, item_rows, att_rows], axis=0)      # (4B, width)


# ----------------------------------------------------------------------------
# Pallas call wrapper
# ----------------------------------------------------------------------------
def _fused_call(a_bd, x_bd, w_bd, att, sel, w1, b1, hw, hb, batch):
    args = (a_bd, x_bd, w_bd, att, sel, w1, b1, hw, hb)
    in_specs = [pl.BlockSpec(a.shape, lambda _: (0, 0)) for a in args]

    flops = 2 * (x_bd.shape[0] * x_bd.shape[1] * w_bd.shape[1]
                 + a_bd.shape[0] * a_bd.shape[1] * w_bd.shape[1]
                 + sel.shape[0] * sel.shape[1] * EMB_DIM
                 + batch * w1.shape[0] * w1.shape[1]
                 + batch * hw.shape[0] * hw.shape[1])
    bytes_accessed = int(sum(a.size * a.dtype.itemsize for a in args) + batch * OUT_W * 4)

    return pl.pallas_call(
        _fused_kernel,
        grid=(1,),
        in_specs=in_specs,
        out_specs=pl.BlockSpec((batch, OUT_W), lambda _: (0, 0)),
        out_shape=jax.ShapeDtypeStruct((batch, OUT_W), jnp.float32),
        compiler_params=pltpu.CompilerParams(dimension_semantics=("arbitrary",)),
        cost_estimate=pl.CostEstimate(flops=int(flops), transcendentals=0,
                                      bytes_accessed=bytes_accessed),
    )(*args)


@functools.partial(jax.jit, static_argnames=("domain",))
def model_forward(packed, u, i, domain):
    n_a = packed["att_A"].shape[0]
    n_b = packed["att_B"].shape[0]
    batch = u.shape[0]
    sel = _build_sel(u, i, domain, n_a, n_b)
    d = "A" if domain == "A" else "B"
    out = _fused_call(packed["A_bd"], packed["X_bd"], packed["W_bd"],
                      packed[f"att_{d}"], sel,
                      packed[f"W1_{d}"], packed[f"B1_{d}"],
                      packed[f"HW_{d}"], packed[f"HB_{d}"], batch)
    user = out[:, _U0:_U0 + EMB_DIM]
    item = out[:, _I0:_I0 + EMB_DIM]
    rev_a = out[:, _RA0:_RA0 + REVIEW_DIM]
    rev_b = out[:, _RB0:_RB0 + REVIEW_DIM]
    return user, item, rev_a, rev_b


# ----------------------------------------------------------------------------
# Parameter construction (deterministic, in-script)
# ----------------------------------------------------------------------------
def _normalize_adj(adj):
    """Â = D^{-1/2} (A + I) D^{-1/2}."""
    n = adj.shape[0]
    a = adj + jnp.eye(n, dtype=jnp.float32)
    deg = jnp.sum(a, axis=1)
    d_inv_sqrt = 1.0 / jnp.sqrt(jnp.maximum(deg, 1e-12))
    return a * d_inv_sqrt[:, None] * d_inv_sqrt[None, :]


def _random_adj(key, n):
    a = (jax.random.uniform(key, (n, n)) > 0.7).astype(jnp.float32)
    a = jnp.maximum(a, a.T)
    return _normalize_adj(a)


def make_params(key, n_a, n_b):
    ks = jax.random.split(key, 24)
    it = iter(range(24))

    def nxt():
        return ks[next(it)]

    def mlp_params():
        return dict(
            w1=jax.random.normal(nxt(), (EMB_DIM, EMB_DIM), jnp.float32) * 0.1,
            b1=jnp.zeros((1, EMB_DIM), jnp.float32),
            w2=jax.random.normal(nxt(), (EMB_DIM, EMB_DIM), jnp.float32) * 0.1,
            b2=jnp.zeros((1, EMB_DIM), jnp.float32),
        )

    return dict(
        adj_rating_A=_random_adj(nxt(), n_a),
        adj_rating_B=_random_adj(nxt(), n_b),
        adj_review_A=_random_adj(nxt(), n_a),
        adj_review_B=_random_adj(nxt(), n_b),
        feat_rating_A=jax.random.normal(nxt(), (n_a, FEAT_DIM), jnp.float32),
        feat_rating_B=jax.random.normal(nxt(), (n_b, FEAT_DIM), jnp.float32),
        feat_review_A=jax.random.normal(nxt(), (n_a, FEAT_DIM), jnp.float32),
        feat_review_B=jax.random.normal(nxt(), (n_b, FEAT_DIM), jnp.float32),
        w_gcn_A=jax.random.normal(nxt(), (FEAT_DIM, RATING_DIM), jnp.float32) * 0.1,
        w_gcn_B=jax.random.normal(nxt(), (FEAT_DIM, RATING_DIM), jnp.float32) * 0.1,
        w_rgcn_A=jax.random.normal(nxt(), (FEAT_DIM, REVIEW_DIM), jnp.float32) * 0.1,
        w_rgcn_B=jax.random.normal(nxt(), (FEAT_DIM, REVIEW_DIM), jnp.float32) * 0.1,
        user_W_Attention_A_A=jax.random.normal(nxt(), (n_a, EMB_DIM), jnp.float32),
        user_W_Attention_B_B=jax.random.normal(nxt(), (n_b, EMB_DIM), jnp.float32),
        umlp_A=mlp_params(), imlp_A=mlp_params(),
        umlp_B=mlp_params(), imlp_B=mlp_params(),
    )


# ----------------------------------------------------------------------------
# Pure-JAX reference (mirrors Model.forward) for verification
# ----------------------------------------------------------------------------
def reference_forward(params, u, i, domain):
    hp = jax.lax.Precision.HIGHEST

    def gcn(adj, x, w):
        return jnp.maximum(jnp.matmul(adj, jnp.matmul(x, w, precision=hp), precision=hp), 0.0)

    def mlp(x, p):
        h = jnp.maximum(jnp.matmul(x, p["w1"], precision=hp) + p["b1"], 0.0)
        return jnp.matmul(h, p["w2"], precision=hp) + p["b2"]

    rating_A = gcn(params["adj_rating_A"], params["feat_rating_A"], params["w_gcn_A"])
    review_A = gcn(params["adj_review_A"], params["feat_review_A"], params["w_rgcn_A"])
    rating_B = gcn(params["adj_rating_B"], params["feat_rating_B"], params["w_gcn_B"])
    review_B = gcn(params["adj_review_B"], params["feat_review_B"], params["w_rgcn_B"])
    user_A = jnp.concatenate([rating_A[u], review_A[u]], axis=1)
    user_B = jnp.concatenate([rating_B[u], review_B[u]], axis=1)
    if domain == "A":
        w = params["user_W_Attention_A_A"][u]
        user = user_A * w + user_B * (1.0 - w)
        item = jnp.concatenate([rating_A[i], review_A[i]], axis=1)
        user, item = mlp(user, params["umlp_A"]), mlp(item, params["imlp_A"])
    else:
        w = params["user_W_Attention_B_B"][u]
        user = user_B * w + user_A * (1.0 - w)
        item = jnp.concatenate([rating_B[i], review_B[i]], axis=1)
        user, item = mlp(user, params["umlp_B"]), mlp(item, params["imlp_B"])
    return user, item, review_A[u], review_B[u]


# ----------------------------------------------------------------------------
if __name__ == "__main__":
    key = jax.random.PRNGKey(0)
    k_params, k_u, k_i = jax.random.split(key, 3)

    N_A = 32   # nodes in domain-A graphs
    N_B = 32   # nodes in domain-B graphs
    BATCH = 8

    params = make_params(k_params, N_A, N_B)
    packed = prepare_packed(params)          # one-time packing, reused across calls
    jax.block_until_ready(packed)

    u = jax.random.randint(k_u, (BATCH,), 0, min(N_A, N_B))
    i = jax.random.randint(k_i, (BATCH,), 0, min(N_A, N_B))

    # two-hot gather-as-matmul silently yields zeros for out-of-range indices;
    # guard here instead (the reference's direct indexing would also misbehave).
    assert int(jnp.max(u)) < min(N_A, N_B) and int(jnp.max(i)) < min(N_A, N_B)

    user, item, rev_a_u, rev_b_u = model_forward(packed, u, i, "A")
    jax.block_until_ready((user, item, rev_a_u, rev_b_u))

    user_b, item_b, rev_a_u_b, rev_b_u_b = model_forward(packed, u, i, "B")
    jax.block_until_ready((user_b, item_b))

    assert user.shape == (BATCH, EMB_DIM)
    assert item.shape == (BATCH, EMB_DIM)
    assert rev_a_u.shape == (BATCH, REVIEW_DIM)
    assert rev_b_u.shape == (BATCH, REVIEW_DIM)

    # verify the fused kernel against a plain-JAX reference (both domains)
    for dom, got in (("A", (user, item, rev_a_u, rev_b_u)),
                     ("B", (user_b, item_b, rev_a_u_b, rev_b_u_b))):
        ref = reference_forward(params, u, i, dom)
        for g, r in zip(got, ref):
            assert jnp.allclose(g, r, rtol=2e-2, atol=2e-2), f"mismatch in domain {dom}"

    print("KERNEL_OK")
</pallas_src>

<mosaic_0001>
module attributes {stable_mosaic.version = 11 : i64} {
  func.func @_fused_kernel(%arg0: i32, %arg1: memref<128x128xf32, #tpu.memory_space<vmem>>, %arg2: memref<128x128xf32, #tpu.memory_space<vmem>>, %arg3: memref<128x32xf32, #tpu.memory_space<vmem>>, %arg4: memref<32x32xf32, #tpu.memory_space<vmem>>, %arg5: memref<32x160xf32, #tpu.memory_space<vmem>>, %arg6: memref<64x64xf32, #tpu.memory_space<vmem>>, %arg7: memref<1x64xf32, #tpu.memory_space<vmem>>, %arg8: memref<128x128xf32, #tpu.memory_space<vmem>>, %arg9: memref<1x128xf32, #tpu.memory_space<vmem>>, %arg10: memref<8x128xf32, #tpu.memory_space<vmem>>) attributes {dimension_semantics = [#tpu.dimension_semantics<arbitrary>], iteration_bounds = array<i64: 1>, scalar_prefetch = 0 : i64, scratch_operands = 0 : i64, tpu.core_type = #tpu.core_type<tc>, window_params = [{pipeline_mode = #tpu.pipeline_mode<synchronous>, transform_indices = @transform_0, window_bounds = array<i64: 128, 128>}, {pipeline_mode = #tpu.pipeline_mode<synchronous>, transform_indices = @transform_1, window_bounds = array<i64: 128, 128>}, {pipeline_mode = #tpu.pipeline_mode<synchronous>, transform_indices = @transform_2, window_bounds = array<i64: 128, 32>}, {pipeline_mode = #tpu.pipeline_mode<synchronous>, transform_indices = @transform_3, window_bounds = array<i64: 32, 32>}, {pipeline_mode = #tpu.pipeline_mode<synchronous>, transform_indices = @transform_4, window_bounds = array<i64: 32, 160>}, {pipeline_mode = #tpu.pipeline_mode<synchronous>, transform_indices = @transform_5, window_bounds = array<i64: 64, 64>}, {pipeline_mode = #tpu.pipeline_mode<synchronous>, transform_indices = @transform_6, window_bounds = array<i64: 1, 64>}, {pipeline_mode = #tpu.pipeline_mode<synchronous>, transform_indices = @transform_7, window_bounds = array<i64: 128, 128>}, {pipeline_mode = #tpu.pipeline_mode<synchronous>, transform_indices = @transform_8, window_bounds = array<i64: 1, 128>}, {pipeline_mode = #tpu.pipeline_mode<synchronous>, transform_indices = @transform_9, window_bounds = array<i64: 8, 128>}]} {
    %c0 = arith.constant 0 : index
    %c0_0 = arith.constant 0 : index
    %0 = vector.load %arg2[%c0, %c0_0] : memref<128x128xf32, #tpu.memory_space<vmem>>, vector<128x128xf32>
    %c0_1 = arith.constant 0 : index
    %c0_2 = arith.constant 0 : index
    %1 = vector.load %arg3[%c0_1, %c0_2] : memref<128x32xf32, #tpu.memory_space<vmem>>, vector<128x32xf32>
    %cst = arith.constant dense<0.000000e+00> : vector<128x32xf32>
    %2 = tpu.matmul %0, %1, %cst {dimension_numbers = #tpu.dot_dimension_numbers<[1], [0], [0], [1], [0, 0, 1, 1], [], []>} : vector<128x128xf32>, vector<128x32xf32>, vector<128x32xf32> -> vector<128x32xf32>
    %c0_3 = arith.constant 0 : index
    %c0_4 = arith.constant 0 : index
    %3 = vector.load %arg1[%c0_3, %c0_4] : memref<128x128xf32, #tpu.memory_space<vmem>>, vector<128x128xf32>
    %cst_5 = arith.constant dense<0.000000e+00> : vector<128x32xf32>
    %4 = tpu.matmul %3, %2, %cst_5 {dimension_numbers = #tpu.dot_dimension_numbers<[1], [0], [0], [1], [0, 0, 1, 1], [], []>} : vector<128x128xf32>, vector<128x32xf32>, vector<128x32xf32> -> vector<128x32xf32>
    %cst_6 = arith.constant 0.000000e+00 : f32
    %5 = vector.broadcast %cst_6 : f32 to vector<128x32xf32>
    %6 = arith.maximumf %4, %5 : vector<128x32xf32>
    %c0_7 = arith.constant 0 : index
    %c0_8 = arith.constant 0 : index
    %7 = vector.load %arg4[%c0_7, %c0_8] : memref<32x32xf32, #tpu.memory_space<vmem>>, vector<32x32xf32>
    %8 = tpu.concatenate %6, %7 in 0 : vector<128x32xf32>, vector<32x32xf32> -> vector<160x32xf32>
    %c0_9 = arith.constant 0 : index
    %c0_10 = arith.constant 0 : index
    %9 = vector.load %arg5[%c0_9, %c0_10] : memref<32x160xf32, #tpu.memory_space<vmem>>, vector<32x160xf32>
    %cst_11 = arith.constant dense<0.000000e+00> : vector<32x32xf32>
    %10 = tpu.matmul %9, %8, %cst_11 {dimension_numbers = #tpu.dot_dimension_numbers<[1], [0], [0], [1], [0, 0, 1, 1], [], []>} : vector<32x160xf32>, vector<160x32xf32>, vector<32x32xf32> -> vector<32x32xf32>
    %11 = vector.extract_strided_slice %10 {offsets = [0, 0], sizes = [8, 32], strides = [1, 1]} : vector<32x32xf32> to vector<8x32xf32>
    %12 = vector.extract_strided_slice %10 {offsets = [8, 0], sizes = [8, 32], strides = [1, 1]} : vector<32x32xf32> to vector<8x32xf32>
    %13 = vector.extract_strided_slice %10 {offsets = [16, 0], sizes = [8, 32], strides = [1, 1]} : vector<32x32xf32> to vector<8x32xf32>
    %14 = vector.extract_strided_slice %10 {offsets = [24, 0], sizes = [8, 32], strides = [1, 1]} : vector<32x32xf32> to vector<8x32xf32>
    %15 = arith.mulf %11, %14 : vector<8x32xf32>
    %cst_12 = arith.constant 1.000000e+00 : f32
    %16 = vector.broadcast %cst_12 : f32 to vector<8x32xf32>
    %17 = arith.subf %16, %14 : vector<8x32xf32>
    %18 = arith.mulf %12, %17 : vector<8x32xf32>
    %19 = arith.addf %15, %18 : vector<8x32xf32>
    %20 = tpu.concatenate %19, %13 in 1 : vector<8x32xf32>, vector<8x32xf32> -> vector<8x64xf32>
    %c0_13 = arith.constant 0 : index
    %c0_14 = arith.constant 0 : index
    %21 = vector.load %arg6[%c0_13, %c0_14] : memref<64x64xf32, #tpu.memory_space<vmem>>, vector<64x64xf32>
    %cst_15 = arith.constant dense<0.000000e+00> : vector<8x64xf32>
    %22 = tpu.matmul %20, %21, %cst_15 {dimension_numbers = #tpu.dot_dimension_numbers<[1], [0], [0], [1], [0, 0, 1, 1], [], []>} : vector<8x64xf32>, vector<64x64xf32>, vector<8x64xf32> -> vector<8x64xf32>
    %c0_16 = arith.constant 0 : index
    %c0_17 = arith.constant 0 : index
    %23 = vector.load %arg7[%c0_16, %c0_17] : memref<1x64xf32, #tpu.memory_space<vmem>>, vector<1x64xf32>
    %24 = vector.broadcast %23 : vector<1x64xf32> to vector<8x64xf32>
    %25 = arith.addf %22, %24 : vector<8x64xf32>
    %cst_18 = arith.constant 0.000000e+00 : f32
    %26 = vector.broadcast %cst_18 : f32 to vector<8x64xf32>
    %27 = arith.maximumf %25, %26 : vector<8x64xf32>
    %28 = tpu.concatenate %27, %11, %12 in 1 : vector<8x64xf32>, vector<8x32xf32>, vector<8x32xf32> -> vector<8x128xf32>
    %c0_19 = arith.constant 0 : index
    %c0_20 = arith.constant 0 : index
    %29 = vector.load %arg8[%c0_19, %c0_20] : memref<128x128xf32, #tpu.memory_space<vmem>>, vector<128x128xf32>
    %cst_21 = arith.constant dense<0.000000e+00> : vector<8x128xf32>
    %30 = tpu.matmul %28, %29, %cst_21 {dimension_numbers = #tpu.dot_dimension_numbers<[1], [0], [0], [1], [0, 0, 1, 1], [], []>} : vector<8x128xf32>, vector<128x128xf32>, vector<8x128xf32> -> vector<8x128xf32>
    %c0_22 = arith.constant 0 : index
    %c0_23 = arith.constant 0 : index
    %31 = vector.load %arg9[%c0_22, %c0_23] : memref<1x128xf32, #tpu.memory_space<vmem>>, vector<1x128xf32>
    %32 = vector.broadcast %31 : vector<1x128xf32> to vector<8x128xf32>
    %33 = arith.addf %30, %32 : vector<8x128xf32>
    %c0_24 = arith.constant 0 : index
    %c0_25 = arith.constant 0 : index
    %34 = vector.load %arg10[%c0_24, %c0_25] : memref<8x128xf32, #tpu.memory_space<vmem>>, vector<8x128xf32>
    tpu.vector_store %arg10[%c0_24, %c0_25], %33 {strides = array<i32>} : memref<8x128xf32, #tpu.memory_space<vmem>>, vector<8x128xf32>,
    return
  }
  func.func @transform_0(%arg0: i32) -> (i32, i32) {
    %c0_i32 = arith.constant 0 : i32
    %c0_i32_0 = arith.constant 0 : i32
    %c0_i32_1 = arith.constant 0 : i32
    return %c0_i32, %c0_i32_0 : i32, i32
  }
  func.func @transform_1(%arg0: i32) -> (i32, i32) {
    %c0_i32 = arith.constant 0 : i32
    %c0_i32_0 = arith.constant 0 : i32
    %c0_i32_1 = arith.constant 0 : i32
    return %c0_i32, %c0_i32_0 : i32, i32
  }
  func.func @transform_2(%arg0: i32) -> (i32, i32) {
    %c0_i32 = arith.constant 0 : i32
    %c0_i32_0 = arith.constant 0 : i32
    %c0_i32_1 = arith.constant 0 : i32
    return %c0_i32, %c0_i32_0 : i32, i32
  }
  func.func @transform_3(%arg0: i32) -> (i32, i32) {
    %c0_i32 = arith.constant 0 : i32
    %c0_i32_0 = arith.constant 0 : i32
    %c0_i32_1 = arith.constant 0 : i32
    return %c0_i32, %c0_i32_0 : i32, i32
  }
  func.func @transform_4(%arg0: i32) -> (i32, i32) {
    %c0_i32 = arith.constant 0 : i32
    %c0_i32_0 = arith.constant 0 : i32
    %c0_i32_1 = arith.constant 0 : i32
    return %c0_i32, %c0_i32_0 : i32, i32
  }
  func.func @transform_5(%arg0: i32) -> (i32, i32) {
    %c0_i32 = arith.constant 0 : i32
    %c0_i32_0 = arith.constant 0 : i32
    %c0_i32_1 = arith.constant 0 : i32
    return %c0_i32, %c0_i32_0 : i32, i32
  }
  func.func @transform_6(%arg0: i32) -> (i32, i32) {
    %c0_i32 = arith.constant 0 : i32
    %c0_i32_0 = arith.constant 0 : i32
    %c0_i32_1 = arith.constant 0 : i32
    return %c0_i32, %c0_i32_0 : i32, i32
  }
  func.func @transform_7(%arg0: i32) -> (i32, i32) {
    %c0_i32 = arith.constant 0 : i32
    %c0_i32_0 = arith.constant 0 : i32
    %c0_i32_1 = arith.constant 0 : i32
    return %c0_i32, %c0_i32_0 : i32, i32
  }
  func.func @transform_8(%arg0: i32) -> (i32, i32) {
    %c0_i32 = arith.constant 0 : i32
    %c0_i32_0 = arith.constant 0 : i32
    %c0_i32_1 = arith.constant 0 : i32
    return %c0_i32, %c0_i32_0 : i32, i32
  }
  func.func @transform_9(%arg0: i32) -> (i32, i32) {
    %c0_i32 = arith.constant 0 : i32
    %c0_i32_0 = arith.constant 0 : i32
    %c0_i32_1 = arith.constant 0 : i32
    return %c0_i32, %c0_i32_0 : i32, i32
  }
}

</mosaic_0001>

<bundles_post_ra>
// kernel: model_forward.1
= control target key start
LH: loop header
LB: loop body
LE: loop exit
PB: predicated region body
PF: predicated region fallthrough
CT: control target
= control target key end

     0   :  { %14 = vsyncpa [#allocation3], 0  ;;  %s1586_s0 = inlined_call_operand.vmem [shape: f32[128,128], index: 0, kind: input, shape index: {}]   ;;  %s1587_s1 = inlined_call_operand.vmem [shape: f32[128,128], index: 1, kind: input, shape index: {}]   ;;  %s1588_s2 = inlined_call_operand.vmem [shape: f32[128,32], index: 2, kind: input, shape index: {}]   ;;  %s1589_s3 = inlined_call_operand.vmem [shape: f32[32,32], index: 3, kind: input, shape index: {}]   ;;  %s1590_s4 = inlined_call_operand.vmem [shape: f32[32,160], index: 4, kind: input, shape index: {}]   ;;  %s1591_s5 = inlined_call_operand.hbm [shape: f32[64,64], index: 5, kind: input, shape index: {}]   ;;  %s1592_s6 = inlined_call_operand.hbm [shape: f32[1,64], index: 6, kind: input, shape index: {}]   ;;  %s1593_s7 = inlined_call_operand.hbm [shape: f32[128,128], index: 7, kind: input, shape index: {}]   ;;  %s1594_s8 = inlined_call_operand.hbm [shape: f32[1,128], index: 8, kind: input, shape index: {}]   ;;  %s1595_s9 = inlined_call_operand.vmem [shape: f32[8,128], index: 9, kind: output, shape index: {}]  }
   0x1   :  { %15 = vsyncpa [#allocation5], 0 }
   0x2   :  { %16 = vsyncpa [#allocation8], 0  ;;  %s1257_s30 = smov [#allocation4]   ;;  %s1258_s11 = smov [#allocation2]  }
   0x3   :  { %s45_s10 = sshll.u32 %s1257_s30, 4  ;;  %s32_s12 = sshll.u32 %s1258_s11, 4  ;;  %s46_s10 = int_to_ptr.vmem [resolvable:$true] %s45_s10  ;;  %s1319_s12 = int_to_ptr.vmem [resolvable:$true] %s32_s12 }
   0x4   :  { %s1163_s15 = scalar_lea.hbm %s1592_s6, 16 }
   0x5   :  { %p1164_p0 = scmp.ne.s32.totalorder %s1592_s6, %s1163_s15  ;;  %p1167_p1 = scmp.lt.u32.totalorder %s1163_s15, %s1592_s6 }
   0x7   :  { %p1169_p2 = pnand %p1167_p1, %p1164_p0 }
   0x9   :  { %1172 = shalt.err (!%p1169_p2)
}
   0xa   :  { %s1173_s20 = scalar_lea.vmem %s46_s10, 16  ;;  %s1177_s21 = scalar_lea.vmem %s46_s10, 32 }
   0xb   :  { %p1174_p3 = scmp.ne.s32.totalorder %s46_s10, %s1173_s20  ;;  %p1178_p4 = scmp.lt.s32.totalorder %s46_s10, %s46_s10 }
   0xc   :  { %p1179_p5 = scmp.lt.s32.totalorder %s1177_s21, %s1173_s20 }
   0xe   :  { %p1180_p6 = por %p1179_p5, %p1178_p4 }
  0x10   :  { %p1181_p7 = pnand %p1180_p6, %p1174_p3 }
  0x12   :  { %1184 = shalt.err (!%p1181_p7)
}
  0x13   :  { %48 = dma.hbm_to_vmem [thread:$0]  %s1592_s6, 16, %s46_s10, [#allocation5]  }
  0x14   :  { %s1185_s26 = scalar_lea.hbm %s1591_s5, 1024 }
  0x15   :  { %p1186_p8 = scmp.ne.s32.totalorder %s1591_s5, %s1185_s26  ;;  %p1189_p9 = scmp.lt.u32.totalorder %s1185_s26, %s1591_s5 }
  0x17   :  { %p1191_p10 = pnand %p1189_p9, %p1186_p8 }
  0x19   :  { %1194 = shalt.err (!%p1191_p10)
}
  0x1a   :  { %s1195_s11 = scalar_lea.vmem %s1319_s12, 1024  ;;  %p1200_p12 = scmp.lt.s32.totalorder %s1319_s12, %s1319_s12 }
  0x1b   :  { %p1196_p11 = scmp.ne.s32.totalorder %s1319_s12, %s1195_s11  ;;  %p1201_p13 = scmp.lt.s32.totalorder %s1195_s11, %s1195_s11 }
  0x1d   :  { %p1202_p0 = por %p1201_p13, %p1200_p12 }
  0x1f   :  { %p1203_p1 = pnand %p1202_p0, %p1196_p11 }
  0x21   :  { %1206 = shalt.err (!%p1203_p1)
}
  0x22   :  { %s1259_s6 = smov 128   ;;  %s1260_s10 = smov 8  }
  0x23   :  { %38 = dma.hbm_to_vmem [thread:$0]  %s1591_s5, 1024, %s1319_s12, [#allocation3], %s1259_s6, %s1259_s6, %s1260_s10  }
  0x24   :  { %s1261_s15 = smov [#allocation6]   ;;  %s1262_s17 = smov [#allocation7]  }
  0x25   :  { %s54_s16 = sshll.u32 %s1261_s15, 4  ;;  %s67_s18 = sshll.u32 %s1262_s17, 4  ;;  %s55_s16 = int_to_ptr.vmem [resolvable:$true] %s54_s16  ;;  %s68_s18 = int_to_ptr.vmem [resolvable:$true] %s67_s18 }
  0x26   :  { %s1207_s21 = scalar_lea.hbm %s1593_s7, 2048 }
  0x27   :  { %p1208_p2 = scmp.ne.s32.totalorder %s1593_s7, %s1207_s21  ;;  %p1211_p3 = scmp.lt.u32.totalorder %s1207_s21, %s1593_s7 }
  0x29   :  { %p1213_p4 = pnand %p1211_p3, %p1208_p2 }
  0x2b   :  { %1216 = shalt.err (!%p1213_p4)
}
  0x2c   :  { %s1217_s5 = scalar_lea.vmem %s55_s16, 2048  ;;  %p1222_p6 = scmp.lt.s32.totalorder %s55_s16, %s55_s16 }
  0x2d   :  { %p1218_p5 = scmp.ne.s32.totalorder %s55_s16, %s1217_s5  ;;  %p1223_p7 = scmp.lt.s32.totalorder %s1217_s5, %s1217_s5 }
  0x2f   :  { %p1224_p8 = por %p1223_p7, %p1222_p6 }
  0x31   :  { %p1225_p9 = pnand %p1224_p8, %p1218_p5 }
  0x33   :  { %1228 = shalt.err (!%p1225_p9)
}
  0x34   :  { %60 = dma.hbm_to_vmem [thread:$0]  %s1593_s7, 2048, %s55_s16, [#allocation5], %s1259_s6, %s1259_s6, %s1260_s10  }
  0x35   :  { %s1229_s29 = scalar_lea.hbm %s1594_s8, 16 }
  0x36   :  { %p1230_p10 = scmp.ne.s32.totalorder %s1594_s8, %s1229_s29  ;;  %p1233_p11 = scmp.lt.u32.totalorder %s1229_s29, %s1594_s8 }
  0x38   :  { %p1235_p12 = pnand %p1233_p11, %p1230_p10 }
  0x3a   :  { %1238 = shalt.err (!%p1235_p12)
}
  0x3b   :  { %s1239_s15 = scalar_lea.vmem %s68_s18, 16  ;;  %s1243_s17 = scalar_lea.vmem %s68_s18, 32 }
  0x3c   :  { %p1240_p13 = scmp.ne.s32.totalorder %s68_s18, %s1239_s15  ;;  %p1244_p0 = scmp.lt.s32.totalorder %s68_s18, %s68_s18 }
  0x3d   :  { %p1245_p1 = scmp.lt.s32.totalorder %s1243_s17, %s1239_s15 }
  0x3f   :  { %p1246_p2 = por %p1245_p1, %p1244_p0 }
  0x41   :  { %p1247_p3 = pnand %p1246_p2, %p1240_p13 }
  0x43   :  { %1250 = shalt.err (!%p1247_p3)
}
  0x44   :  { %70 = dma.hbm_to_vmem [thread:$0]  %s1594_s8, 16, %s68_s18, [#allocation8]  }
  0x45   :  { %1251 = dma.done.wait [#allocation3], 1024  }
  0x46   :  { %1252 = vsyncadd [#allocation3], 4294966272 }
  0x47   :  { %1253 = dma.done.wait [#allocation5], 2064  }
  0x48   :  { %1254 = vsyncadd [#allocation5], 4294965232 }
  0x49   :  { %1255 = dma.done.wait [#allocation8], 16  }
  0x4a   :  { %1256 = vsyncadd [#allocation8], 4294967280  ;;  %v99_v0 = vld [vmem:[%s1588_s2] sm:$0xff]  ;;  %v100_v1 = vld [vmem:[%s1588_s2 + $0x8] sm:$0xff]  ;;  %vm449_vm0 = vcmask 261120   ;;  %vm1264_vm1 = vmmov 0  }
  0x4b   :  { %v101_v2 = vld [vmem:[%s1588_s2 + $0x10] sm:$0xff]  ;;  %v1021_v3 = vpack.c.bf16 %v100_v1, %v99_v0  ;;  %v102_v4 = vld [vmem:[%s1588_s2 + $0x18] sm:$0xff]  ;;  %v103_v6 = vld [vmem:[%s1588_s2 + $0x20] sm:$0xff]  ;;  %s1267_s26 = smov 32   ;;  %s1268_s27 = smov 64   ;;  %vm571_vm2 = vcmask 523264  }
  0x4c   :  { %v1025_v5 = vpack.c.bf16 %v102_v4, %v101_v2  ;;  %v104_v7 = vld [vmem:[%s1588_s2 + $0x28] sm:$0xff]  ;;  %v83_v9 = vld [vmem:[%s1587_s1] sm:$0xff]  ;;  %v105_v10 = vld [vmem:[%s1588_s2 + $0x30] sm:$0xff]  ;;  %vm655_vm3 = vcmask 785408  }
  0x4d   :  { %1022 = vmatprep.subr.bf16.mxu0 %v1021_v3  ;;  %v1029_v8 = vpack.c.bf16 %v104_v7, %v103_v6  ;;  %v106_v11 = vld [vmem:[%s1588_s2 + $0x38] sm:$0xff]  ;;  %887 = vmatprep.mubr.f32.mxu0 %v83_v9  ;;  %v107_v13 = vld [vmem:[%s1588_s2 + $0x40] sm:$0xff]  ;;  %v108_v14 = vld [vmem:[%s1588_s2 + $0x48] sm:$0xff] }
  0x4e   :  { %1024 = vmatpush3.bf16.msra.mxu0 %v1021_v3  ;;  %v1033_v12 = vpack.c.bf16 %v106_v11, %v105_v10  ;;  %v1037_v15 = vpack.c.bf16 %v108_v14, %v107_v13  ;;  %v109_v16 = vld [vmem:[%s1588_s2 + $0x50] sm:$0xff]  ;;  %v110_v17 = vld [vmem:[%s1588_s2 + $0x58] sm:$0xff]  ;;  %v111_v19 = vld [vmem:[%s1588_s2 + $0x60] sm:$0xff] }
  0x4f   :  { %1026 = vmatprep.subr.bf16.mxu0 %v1025_v5  ;;  %v1041_v18 = vpack.c.bf16 %v110_v17, %v109_v16  ;;  %v112_v20 = vld [vmem:[%s1588_s2 + $0x68] sm:$0xff]  ;;  %v113_v22 = vld [vmem:[%s1588_s2 + $0x70] sm:$0xff]  ;;  %v114_v23 = vld [vmem:[%s1588_s2 + $0x78] sm:$0xff]  ;;  %v1263_v16 = vmov 0.0|0.0  }
  0x50   :  { %v1045_v21 = vpack.c.bf16 %v112_v20, %v111_v19  ;;  %v1049_v24 = vpack.c.bf16 %v114_v23, %v113_v22  ;;  %v84_v25 = vld [vmem:[%s1587_s1 + $0x8] sm:$0xff]  ;;  %v85_v26 = vld [vmem:[%s1587_s1 + $0x10] sm:$0xff]  ;;  %v86_v27 = vld [vmem:[%s1587_s1 + $0x18] sm:$0xff] }
  0x51   :  { %v87_v28 = vld [vmem:[%s1587_s1 + $0x20] sm:$0xff]  ;;  %v88_v29 = vld [vmem:[%s1587_s1 + $0x28] sm:$0xff]  ;;  %v89_v30 = vld [vmem:[%s1587_s1 + $0x30] sm:$0xff] }
  0x52   :  { %1028 = vmatpush3.bf16.msra.mxu0 %v1025_v5  ;;  %v90_v31 = vld [vmem:[%s1587_s1 + $0x38] sm:$0xff]  ;;  %v91_v32 = vld [vmem:[%s1587_s1 + $0x40] sm:$0xff]  ;;  %v92_v33 = vld [vmem:[%s1587_s1 + $0x48] sm:$0xff] }
  0x53   :  { %1030 = vmatprep.subr.bf16.mxu0 %v1029_v8  ;;  %v93_v34 = vld [vmem:[%s1587_s1 + $0x50] sm:$0xff]  ;;  %v94_v35 = vld [vmem:[%s1587_s1 + $0x58] sm:$0xff]  ;;  %v95_v36 = vld [vmem:[%s1587_s1 + $0x60] sm:$0xff] }
  0x54   :  { %v96_v37 = vld [vmem:[%s1587_s1 + $0x68] sm:$0xff]  ;;  %v97_v38 = vld [vmem:[%s1587_s1 + $0x70] sm:$0xff]  ;;  %v98_v39 = vld [vmem:[%s1587_s1 + $0x78] sm:$0xff] }
  0x55   :  { %v260_v40 = vld [vmem:[%s1586_s0] sm:$0xff]  ;;  %v261_v1 = vld [vmem:[%s1586_s0 + $0x8] sm:$0xff]  ;;  %v262_v2 = vld [vmem:[%s1586_s0 + $0x10] sm:$0xff] }
  0x56   :  { %1032 = vmatpush3.bf16.msra.mxu0 %v1029_v8  ;;  %943 = vmatprep.mubr.f32.mxu1 %v260_v40  ;;  %v263_v3 = vld [vmem:[%s1586_s0 + $0x18] sm:$0xff]  ;;  %v264_v4 = vld [vmem:[%s1586_s0 + $0x20] sm:$0xff]  ;;  %v265_v5 = vld [vmem:[%s1586_s0 + $0x28] sm:$0xff] }
  0x57   :  { %1034 = vmatprep.subr.bf16.mxu0 %v1033_v12  ;;  %v266_v6 = vld [vmem:[%s1586_s0 + $0x30] sm:$0xff]  ;;  %v267_v7 = vld [vmem:[%s1586_s0 + $0x38] sm:$0xff]  ;;  %v268_v8 = vld [vmem:[%s1586_s0 + $0x40] sm:$0xff] }
  0x58   :  { %v269_v9 = vld [vmem:[%s1586_s0 + $0x48] sm:$0xff]  ;;  %v270_v10 = vld [vmem:[%s1586_s0 + $0x50] sm:$0xff]  ;;  %v271_v11 = vld [vmem:[%s1586_s0 + $0x58] sm:$0xff] }
  0x59   :  { %v273_v13 = vld [vmem:[%s1586_s0 + $0x68] sm:$0xff]  ;;  %v274_v14 = vld [vmem:[%s1586_s0 + $0x70] sm:$0xff] }
  0x5a   :  { %1036 = vmatpush3.bf16.msra.mxu0 %v1033_v12  ;;  %v272_v12 = vld [vmem:[%s1586_s0 + $0x60] sm:$0xff]  ;;  %v442_v17 = vld [vmem:[%s1590_s4 + $0x8] sm:$0xff] }
  0x5b   :  { %1038 = vmatprep.subr.bf16.mxu0 %v1037_v15 }
  0x5e   :  { %1040 = vmatpush3.bf16.msra.mxu0 %v1037_v15  ;;  %v275_v15 = vld [vmem:[%s1586_s0 + $0x78] sm:$0xff] }
  0x5f   :  { %1042 = vmatprep.subr.bf16.mxu0 %v1041_v18 }
  0x62   :  { %1044 = vmatpush3.bf16.msra.mxu0 %v1041_v18 }
  0x63   :  { %1046 = vmatprep.subr.bf16.mxu0 %v1045_v21 }
  0x66   :  { %1048 = vmatpush3.bf16.msra.mxu0 %v1045_v21 }
  0x67   :  { %1050 = vmatprep.subr.bf16.mxu0 %v1049_v24 }
  0x6a   :  { %1052 = vmatpush3.bf16.msra.mxu0 %v1049_v24 }
  0x6b   :  { %1085 = vmatprep.subr.bf16.mxu0 %v1263_v16 }
  0x6d   :  { %888 = vmatmul.mubr.f32.vlgmr.msra.gmra.mrb[0].mxu0 %v84_v25 }
  0x6e   :  { %890 = vmatprep.mubr.f32.mxu0 %v85_v26 }
  0x71   :  { %891 = vmatmul.mubr.f32.gmra.mrb[2].mxu0 %v86_v27 }
  0x72   :  { %893 = vmatprep.mubr.f32.mxu0 %v87_v28 }
  0x75   :  { %894 = vmatmul.mubr.f32.gmra.mrb[4].mxu0 %v88_v29 }
  0x76   :  { %896 = vmatprep.mubr.f32.mxu0 %v89_v30 }
  0x79   :  { %897 = vmatmul.mubr.f32.gmra.mrb[6].mxu0 %v90_v31 }
  0x7a   :  { %899 = vmatprep.mubr.f32.mxu0 %v91_v32 }
  0x7d   :  { %900 = vmatmul.mubr.f32.gmra.mrb[8].mxu0 %v92_v33 }
  0x7e   :  { %902 = vmatprep.mubr.f32.mxu0 %v93_v34 }
  0x81   :  { %903 = vmatmul.mubr.f32.gmra.mrb[10].mxu0 %v94_v35 }
  0x82   :  { %905 = vmatprep.mubr.f32.mxu0 %v95_v36 }
  0x85   :  { %906 = vmatmul.mubr.f32.gmra.mrb[12].mxu0 %v96_v37 }
  0x86   :  { %908 = vmatprep.mubr.f32.mxu0 %v97_v38 }
  0x89   :  { %909 = vmatmul.mubr.f32.gmra.mrb[14].mxu0 %v98_v39 }
  0x8a   :  { %758 = vmatprep.mubr.msk.f32.mxu0 %vm449_vm0, %v442_v17  ;;  %v562_v17 = vld [vmem:[#allocation2 + $0x30] sm:$0xff] }
 0x140   :  { %v889_v41 = vpop.f32.mrb[0].mxu0 }
 0x141   :  { %v181_v42 = vpop.f32.mrb[1].mxu0 }
 0x142   :  { %v1053_v43 = vpack.c.bf16 %v889_v41, %v181_v42 }
 0x144   :  { %v892_v44 = vpop.f32.mrb[2].mxu0  ;;  %1054 = vmatprep.subr.bf16.mxu1 %v1053_v43 }
 0x145   :  { %v191_v45 = vpop.f32.mrb[3].mxu0  ;;  %1056 = vmatpush3.bf16.msra.mxu1 %v1053_v43 }
 0x146   :  { %v1057_v46 = vpack.c.bf16 %v892_v44, %v191_v45 }
 0x148   :  { %v895_v47 = vpop.f32.mrb[4].mxu0  ;;  %1058 = vmatprep.subr.bf16.mxu1 %v1057_v46 }
 0x149   :  { %v201_v48 = vpop.f32.mrb[5].mxu0  ;;  %1060 = vmatpush3.bf16.msra.mxu1 %v1057_v46 }
 0x14a   :  { %v1061_v49 = vpack.c.bf16 %v895_v47, %v201_v48 }
 0x14c   :  { %v898_v50 = vpop.f32.mrb[6].mxu0  ;;  %1062 = vmatprep.subr.bf16.mxu1 %v1061_v49 }
 0x14d   :  { %v211_v51 = vpop.f32.mrb[7].mxu0  ;;  %1064 = vmatpush3.bf16.msra.mxu1 %v1061_v49 }
 0x14e   :  { %v1065_v52 = vpack.c.bf16 %v898_v50, %v211_v51 }
 0x150   :  { %v901_v53 = vpop.f32.mrb[8].mxu0  ;;  %1066 = vmatprep.subr.bf16.mxu1 %v1065_v52 }
 0x151   :  { %v221_v54 = vpop.f32.mrb[9].mxu0  ;;  %1068 = vmatpush3.bf16.msra.mxu1 %v1065_v52 }
 0x152   :  { %v1069_v55 = vpack.c.bf16 %v901_v53, %v221_v54 }
 0x154   :  { %v904_v56 = vpop.f32.mrb[10].mxu0  ;;  %1070 = vmatprep.subr.bf16.mxu1 %v1069_v55 }
 0x155   :  { %v231_v57 = vpop.f32.mrb[11].mxu0  ;;  %1072 = vmatpush3.bf16.msra.mxu1 %v1069_v55 }
 0x156   :  { %v1073_v58 = vpack.c.bf16 %v904_v56, %v231_v57  ;;  %v437_v57 = vld [vmem:[%s1589_s3] sm:$0xff] }
 0x158   :  { %v907_v59 = vpop.f32.mrb[12].mxu0  ;;  %1074 = vmatprep.subr.bf16.mxu1 %v1073_v58 }
 0x159   :  { %v241_v60 = vpop.f32.mrb[13].mxu0  ;;  %1076 = vmatpush3.bf16.msra.mxu1 %v1073_v58  ;;  %v438_v58 = vld [vmem:[%s1589_s3 + $0x8] sm:$0xff] }
 0x15a   :  { %v1077_v61 = vpack.c.bf16 %v907_v59, %v241_v60  ;;  %v1110_v60 = vpack.c.bf16 %v438_v58, %v437_v57  ;;  %v672_v57 = vld [vmem:[#allocation6 + $0x78] sm:$0xff] }
 0x15c   :  { %v910_v62 = vpop.f32.mrb[14].mxu0  ;;  %1078 = vmatprep.subr.bf16.mxu1 %v1077_v61 }
 0x15d   :  { %v251_v63 = vpop.f32.mrb[15].mxu0  ;;  %1080 = vmatpush3.bf16.msra.mxu1 %v1077_v61  ;;  %v439_v61 = vld [vmem:[%s1589_s3 + $0x10] sm:$0xff] }
 0x15e   :  { %v1081_v0 = vpack.c.bf16 %v910_v62, %v251_v63  ;;  %v440_v62 = vld [vmem:[%s1589_s3 + $0x18] sm:$0xff] }
 0x15f   :  { %v1113_v63 = vpack.c.bf16 %v440_v62, %v439_v61 }
 0x160   :  { %1082 = vmatprep.subr.bf16.mxu1 %v1081_v0 }
 0x161   :  { %1084 = vmatpush3.bf16.msra.mxu1 %v1081_v0  ;;  %v441_v0 = vld [vmem:[%s1590_s4] sm:$0xff] }
 0x162   :  { %1127 = vmatprep.subr.bf16.mxu1 %v1263_v16 }
 0x164   :  { %944 = vmatmul.mubr.f32.vlgmr.msra.gmra.mrb[0].mxu1 %v261_v1  ;;  %v444_v1 = vld [vmem:[%s1590_s4 + $0x18] sm:$0xff] }
 0x165   :  { %946 = vmatprep.mubr.f32.mxu1 %v262_v2  ;;  %v443_v2 = vld [vmem:[%s1590_s4 + $0x10] sm:$0xff] }
 0x168   :  { %947 = vmatmul.mubr.f32.gmra.mrb[2].mxu1 %v263_v3  ;;  %v446_v3 = vld [vmem:[%s1590_s4 + $0x28] sm:$0xff] }
 0x169   :  { %949 = vmatprep.mubr.f32.mxu1 %v264_v4  ;;  %v445_v4 = vld [vmem:[%s1590_s4 + $0x20] sm:$0xff] }
 0x16c   :  { %950 = vmatmul.mubr.f32.gmra.mrb[4].mxu1 %v265_v5  ;;  %v448_v5 = vld [vmem:[%s1590_s4 + $0x38] sm:$0xff] }
 0x16d   :  { %952 = vmatprep.mubr.f32.mxu1 %v266_v6  ;;  %v447_v6 = vld [vmem:[%s1590_s4 + $0x30] sm:$0xff]  ;;  %s1266_s4 = smov 96  }
 0x170   :  { %953 = vmatmul.mubr.f32.gmra.mrb[6].mxu1 %v267_v7  ;;  %v556_v7 = vld [vmem:[#allocation2] sm:$0xff] }
 0x171   :  { %955 = vmatprep.mubr.f32.mxu1 %v268_v8  ;;  %v557_v8 = vld [vmem:[#allocation2 + $0x8] sm:$0xff] }
 0x174   :  { %956 = vmatmul.mubr.f32.gmra.mrb[8].mxu1 %v269_v9  ;;  %v558_v9 = vld [vmem:[#allocation2 + $0x10] sm:$0xff] }
 0x175   :  { %958 = vmatprep.mubr.f32.mxu1 %v270_v10  ;;  %v1116_v10 = vpack.c.bf16 %v557_v8, %v556_v7 }
 0x178   :  { %959 = vmatmul.mubr.f32.gmra.mrb[10].mxu1 %v271_v11  ;;  %v559_v11 = vld [vmem:[#allocation2 + $0x18] sm:$0xff] }
 0x179   :  { %961 = vmatprep.mubr.f32.mxu1 %v272_v12  ;;  %v1119_v12 = vpack.c.bf16 %v559_v11, %v558_v9 }
 0x17c   :  { %962 = vmatmul.mubr.f32.gmra.mrb[12].mxu1 %v273_v13  ;;  %v560_v13 = vld [vmem:[#allocation2 + $0x20] sm:$0xff] }
 0x17d   :  { %964 = vmatprep.mubr.f32.mxu1 %v274_v14  ;;  %v561_v14 = vld [vmem:[#allocation2 + $0x28] sm:$0xff] }
 0x180   :  { %965 = vmatmul.mubr.f32.gmra.mrb[14].mxu1 %v275_v15  ;;  %v1122_v15 = vpack.c.bf16 %v561_v14, %v560_v13 }
 0x237   :  { %v945_v18 = vpop.f32.mrb[0].mxu1 }
 0x238   :  { %v422_v19 = vmax.f32 %v945_v18, 0.0  ;;  %v342_v20 = vpop.f32.mrb[1].mxu1  ;;  %v563_v18 = vld [vmem:[#allocation2 + $0x38] sm:$0xff] }
 0x239   :  { %v421_v21 = vmax.f32 %v342_v20, 0.0  ;;  %v1265_v20 = vmov 0.0  }
 0x23a   :  { %1018 = vmatprep.mubr.msk.f32.mxu1 %vm1264_vm1, %v1265_v20 }
 0x23b   :  { %v1086_v22 = vpack.c.bf16 %v422_v19, %v421_v21  ;;  %v948_v23 = vpop.f32.mrb[2].mxu1  ;;  %v1125_v19 = vpack.c.bf16 %v563_v18, %v562_v17  ;;  %v657_v21 = vld [vmem:[#allocation6] sm:$0xff] }
 0x23c   :  { %v424_v24 = vmax.f32 %v948_v23, 0.0  ;;  %v352_v25 = vpop.f32.mrb[3].mxu1  ;;  %v659_v23 = vld [vmem:[#allocation6 + $0x10] sm:$0xff] }
 0x23d   :  { %v423_v26 = vmax.f32 %v352_v25, 0.0  ;;  %1087 = vmatpush1.bf16.msra.mxu0 %v1086_v22  ;;  %v658_v22 = vld [vmem:[#allocation6 + $0x8] sm:$0xff] }
 0x23e   :  { %1088 = vmatprep.subr.bf16.mxu0 %v1263_v16  ;;  %v1128_v25 = vpack.c.bf16 %v658_v22, %v657_v21 }
 0x23f   :  { %v1089_v27 = vpack.c.bf16 %v424_v24, %v423_v26  ;;  %v951_v28 = vpop.f32.mrb[4].mxu1  ;;  %v660_v26 = vld [vmem:[#allocation6 + $0x18] sm:$0xff] }
 0x240   :  { %v426_v29 = vmax.f32 %v951_v28, 0.0  ;;  %v362_v30 = vpop.f32.mrb[5].mxu1  ;;  %1129 = vmatpush3.bf16.msra.mxu1 %v1128_v25  ;;  %v1131_v28 = vpack.c.bf16 %v660_v26, %v659_v23 }
 0x241   :  { %v425_v31 = vmax.f32 %v362_v30, 0.0  ;;  %1090 = vmatpush1.bf16.msra.mxu0 %v1089_v27  ;;  %1130 = vmatprep.subr.bf16.mxu1 %v1263_v16  ;;  %v662_v30 = vld [vmem:[#allocation6 + $0x28] sm:$0xff] }
 0x242   :  { %1091 = vmatprep.subr.bf16.mxu0 %v1263_v16 }
 0x243   :  { %v1092_v32 = vpack.c.bf16 %v426_v29, %v425_v31  ;;  %v954_v33 = vpop.f32.mrb[6].mxu1  ;;  %v661_v29 = vld [vmem:[#allocation6 + $0x20] sm:$0xff] }
 0x244   :  { %v428_v34 = vmax.f32 %v954_v33, 0.0  ;;  %v372_v35 = vpop.f32.mrb[7].mxu1  ;;  %1132 = vmatpush3.bf16.msra.mxu1 %v1131_v28  ;;  %v1134_v33 = vpack.c.bf16 %v662_v30, %v661_v29 }
 0x245   :  { %v427_v36 = vmax.f32 %v372_v35, 0.0  ;;  %1093 = vmatpush1.bf16.msra.mxu0 %v1092_v32  ;;  %1133 = vmatprep.subr.bf16.mxu1 %v1263_v16  ;;  %v664_v35 = vld [vmem:[#allocation6 + $0x38] sm:$0xff] }
 0x246   :  { %1094 = vmatprep.subr.bf16.mxu0 %v1263_v16 }
 0x247   :  { %v1095_v37 = vpack.c.bf16 %v428_v34, %v427_v36  ;;  %v957_v38 = vpop.f32.mrb[8].mxu1  ;;  %v663_v34 = vld [vmem:[#allocation6 + $0x30] sm:$0xff] }
 0x248   :  { %v430_v39 = vmax.f32 %v957_v38, 0.0  ;;  %v382_v40 = vpop.f32.mrb[9].mxu1  ;;  %1135 = vmatpush3.bf16.msra.mxu1 %v1134_v33  ;;  %v1137_v38 = vpack.c.bf16 %v664_v35, %v663_v34 }
 0x249   :  { %v429_v41 = vmax.f32 %v382_v40, 0.0  ;;  %1096 = vmatpush1.bf16.msra.mxu0 %v1095_v37  ;;  %1136 = vmatprep.subr.bf16.mxu1 %v1263_v16  ;;  %v666_v40 = vld [vmem:[#allocation6 + $0x48] sm:$0xff] }
 0x24a   :  { %1097 = vmatprep.subr.bf16.mxu0 %v1263_v16 }
 0x24b   :  { %v1098_v42 = vpack.c.bf16 %v430_v39, %v429_v41  ;;  %v960_v43 = vpop.f32.mrb[10].mxu1  ;;  %v665_v39 = vld [vmem:[#allocation6 + $0x40] sm:$0xff] }
 0x24c   :  { %v432_v44 = vmax.f32 %v960_v43, 0.0  ;;  %v392_v45 = vpop.f32.mrb[11].mxu1  ;;  %1138 = vmatpush3.bf16.msra.mxu1 %v1137_v38 }
 0x24d   :  { %v431_v46 = vmax.f32 %v392_v45, 0.0  ;;  %1099 = vmatpush1.bf16.msra.mxu0 %v1098_v42  ;;  %v1140_v45 = vpack.c.bf16 %v666_v40, %v665_v39  ;;  %1139 = vmatprep.subr.bf16.mxu1 %v1263_v16 }
 0x24e   :  { %1100 = vmatprep.subr.bf16.mxu0 %v1263_v16 }
 0x24f   :  { %v1101_v47 = vpack.c.bf16 %v432_v44, %v431_v46  ;;  %v963_v48 = vpop.f32.mrb[12].mxu1 }
 0x250   :  { %v434_v49 = vmax.f32 %v963_v48, 0.0  ;;  %v402_v50 = vpop.f32.mrb[13].mxu1  ;;  %v668_v48 = vld [vmem:[#allocation6 + $0x58] sm:$0xff]  ;;  %1141 = vmatpush3.bf16.msra.mxu1 %v1140_v45 }
 0x251   :  { %v433_v51 = vmax.f32 %v402_v50, 0.0  ;;  %1102 = vmatpush1.bf16.msra.mxu0 %v1101_v47  ;;  %v667_v47 = vld [vmem:[#allocation6 + $0x50] sm:$0xff]  ;;  %1142 = vmatprep.subr.bf16.mxu1 %v1263_v16 }
 0x252   :  { %1103 = vmatprep.subr.bf16.mxu0 %v1263_v16  ;;  %v1143_v50 = vpack.c.bf16 %v668_v48, %v667_v47 }
 0x253   :  { %v1104_v52 = vpack.c.bf16 %v434_v49, %v433_v51  ;;  %v966_v53 = vpop.f32.mrb[14].mxu1  ;;  %v669_v51 = vld [vmem:[#allocation6 + $0x60] sm:$0xff] }
 0x254   :  { %v436_v54 = vmax.f32 %v966_v53, 0.0  ;;  %v412_v55 = vpop.f32.mrb[15].mxu1  ;;  %1144 = vmatpush3.bf16.msra.mxu1 %v1143_v50 }
 0x255   :  { %v435_v56 = vmax.f32 %v412_v55, 0.0  ;;  %1105 = vmatpush1.bf16.msra.mxu0 %v1104_v52  ;;  %v670_v52 = vld [vmem:[#allocation6 + $0x68] sm:$0xff]  ;;  %1145 = vmatprep.subr.bf16.mxu1 %v1263_v16 }
 0x256   :  { %1106 = vmatprep.subr.bf16.mxu0 %v1263_v16  ;;  %v1146_v53 = vpack.c.bf16 %v670_v52, %v669_v51 }
 0x257   :  { %v1107_v59 = vpack.c.bf16 %v436_v54, %v435_v56  ;;  %v671_v56 = vld [vmem:[#allocation6 + $0x70] sm:$0xff] }
 0x258   :  { %1147 = vmatpush3.bf16.msra.mxu1 %v1146_v53  ;;  %v1149_v58 = vpack.c.bf16 %v672_v57, %v671_v56 }
 0x259   :  { %1108 = vmatpush1.bf16.msra.mxu0 %v1107_v59  ;;  %1148 = vmatprep.subr.bf16.mxu1 %v1263_v16  ;;  %v762_v59 = vld [vmem:[#allocation4] ss:$0 sm:$0xff] }
 0x25a   :  { %1109 = vmatprep.subr.bf16.mxu0 %v1263_v16 }
 0x25c   :  { %1150 = vmatpush3.bf16.msra.mxu1 %v1149_v58 }
 0x25d   :  { %1111 = vmatpush1.bf16.msra.mxu0 %v1110_v60 }
 0x25e   :  { %1112 = vmatprep.subr.bf16.mxu0 %v1263_v16 }
 0x261   :  { %1114 = vmatpush1.bf16.msra.mxu0 %v1113_v63 }
 0x262   :  { %1115 = vmatprep.subr.bf16.mxu0 %v1263_v16 }
 0x264   :  { %527 = vmatmul.mubr.f32.vlgmr.msra.gmra.mrb[16].mxu0 %v441_v0 }
 0x265   :  { %759 = vmatprep.mubr.msk.f32.mxu0 %vm449_vm0, %v444_v1  ;;  %1117 = vmatpush3.bf16.msra.mxu0 %v1116_v10 }
 0x266   :  { %1118 = vmatprep.subr.bf16.mxu0 %v1263_v16 }
 0x268   :  { %532 = vmatmul.mubr.f32.gmra.mrb[18].mxu0 %v443_v2 }
 0x269   :  { %760 = vmatprep.mubr.msk.f32.mxu0 %vm449_vm0, %v446_v3  ;;  %1120 = vmatpush3.bf16.msra.mxu0 %v1119_v12  ;;  %v764_v3 = vld [vmem:[#allocation7] ss:$0 sm:$0xff] }
 0x26a   :  { %1121 = vmatprep.subr.bf16.mxu0 %v1263_v16 }
 0x26c   :  { %537 = vmatmul.mubr.f32.gmra.mrb[20].mxu0 %v445_v4 }
 0x26d   :  { %761 = vmatprep.mubr.msk.f32.mxu0 %vm449_vm0, %v448_v5  ;;  %1123 = vmatpush3.bf16.msra.mxu0 %v1122_v15 }
 0x26e   :  { %1124 = vmatprep.subr.bf16.mxu0 %v1263_v16 }
 0x270   :  { %542 = vmatmul.mubr.f32.gmra.mrb[22].mxu0 %v447_v6 }
 0x271   :  { %1126 = vmatpush3.bf16.msra.mxu0 %v1125_v19  ;;  %983 = vmatprep.mubr.msk.f32.mxu0 %vm1264_vm1, %v1265_v20 }
 0x337   :  { %v528_v24 = vpop.f32.mrb[16].mxu0 }
 0x338   :  { %v530_v27 = vpop.f32.mrb[17].mxu0 }
 0x33b   :  { %v533_v31 = vpop.f32.mrb[18].mxu0 }
 0x33c   :  { %651 = vrot.lane.b32.xlu1 %v533_v31, %s1266_s4  ;;  %v535_v32 = vpop.f32.mrb[19].mxu0 }
 0x33f   :  { %v538_v36 = vpop.f32.mrb[20].mxu0 }
 0x340   :  { %552 = vrot.lane.b32.xlu0 %v538_v36, %s1267_s26  ;;  %v540_v37 = vpop.f32.mrb[21].mxu0 }
 0x343   :  { %v543_v41 = vpop.f32.mrb[22].mxu0 }
 0x344   :  { %v547_v42 = vmul.f32 %v543_v41, %v528_v24  ;;  %v548_v43 = vsub.f32 1.0, %v543_v41  ;;  %647 = vrot.lane.b32.xlu0 %v528_v24, %s1268_s27  ;;  %v545_v44 = vpop.f32.mrb[23].mxu0 }
 0x346   :  { %v549_v46 = vmul.f32 %v548_v43, %v533_v31 }
 0x348   :  { %v550_v49 = vadd.f32 %v549_v46, %v547_v42 }
 0x3ae   :  { %v652_v1 = vpop.permute.xlu1 %651 }
 0x3b2   :  { %v553_v54 = vpop.permute.xlu0 %552 }
 0x3b3   :  { %v555_v55 = vsel %vm449_vm0, %v550_v49, %v553_v54 }
 0x3b4   :  { %984 = vmatmul.mubr.msk.f32.vlgmr.msra.gmra.mrb[24].mxu0 %vm571_vm2, %v555_v55 }
 0x3b6   :  { %v648_v0 = vpop.permute.xlu0 %647 }
 0x487   :  { %v641_v60 = vpop.f32.mrb[24].mxu0 }
 0x488   :  { %v642_v61 = vadd.f32 %v762_v59, %v641_v60  ;;  %v985_v62 = vpop.f32.mrb[25].mxu0 }
 0x48a   :  { %v645_v63 = vmax.f32 %v642_v61, 0.0 }
 0x48c   :  { %v654_v16 = vsel %vm571_vm2, %v645_v63, %v648_v0 }
 0x48d   :  { %v656_v2 = vsel %vm655_vm3, %v654_v16, %v652_v1 }
 0x48e   :  { %1019 = vmatmul.mubr.f32.vlgmr.msra.gmra.mrb[16].mxu1 %v656_v2 }
 0x561   :  { %v746_v4 = vpop.f32.mrb[16].mxu1 }
 0x562   :  { %v747_v5 = vadd.f32 %v764_v3, %v746_v4  ;;  %v1020_v6 = vpop.f32.mrb[17].mxu1 }
 0x564   :  { %750 = vst [vmem:[%s1595_s9] sm:$0xff] %v747_v5 }
 0x565   :  { %755 = vsyncpa [#allocation3], 1 }
 0x566   :  { %756 = vsyncpa [#allocation5], 1 }
 0x567   :  { %757 = vsyncpa [#allocation8], 1 }

</bundles_post_ra>
